<compile_context>
chip_gen: v6e
topology: v6e:2x2x1
jax: 0.10.0
libtpu: 0.0.40
codegen_flags: <defaults>
</compile_context>

<pallas_src>
import jax
import jax.numpy as jnp
from jax.experimental import pallas as pl
from jax.experimental.pallas import tpu as pltpu

HIDDEN = 128


def _round_up(n, m):
    return ((n + m - 1) // m) * m


def critic_kernel(x_ref, w1_ref, b1_ref, w3_ref, b3_ref, out_ref):
    # x:  [TM, S] f32   w1: [S, 128]   b1: [1, 128]
    # w3: [1, 128]      b3: [1, 1] (SMEM scalar)    out: [1, TM] (lane-dense)
    x = x_ref[...]
    w1 = w1_ref[...]
    S = x.shape[1]

    # layer_1: K=S is tiny -> S f32 VPU broadcast multiply-adds (keeps the MXU
    # free and avoids bf16 casts).  b1 broadcast happens once, outside the loop.
    h = b1_ref[...] + x[:, 0:1] * w1[0:1, :]
    for s in range(1, S):                       # unrolled at trace time (S small)
        h = h + x[:, s:s + 1] * w1[s:s + 1, :]
    h = jnp.maximum(h, 0.0)                     # ReLU, f32 on the VPU

    # layer_3: N=1 output column would waste the MXU -> VPU multiply + XLU lane
    # reduction; scalar bias comes from SMEM.
    v = jnp.sum(h * w3_ref[...], axis=-1) + b3_ref[0, 0]      # [TM] f32
    out_ref[...] = v[None, :].astype(out_ref.dtype)            # [1, TM] lane-dense


def critic_forward(x, w1, b1, w3, b3, *, tm=2048, core_parallel=False):
    """x: [B, S] float32 states.  Returns [B, 1] float32 state values."""
    B, S = x.shape
    tm = max(128, _round_up(tm, 128))           # tile multiple of 128 for dense stores

    if B <= tm:
        # Single tile covering the whole batch: block dims == array dims, so no
        # (8,128) divisibility requirement and no padding at all.
        TM, G = B, 1
    else:
        # Multiple tiles; the last block may be ragged (Pallas masks OOB rows).
        TM = tm
        G = pl.cdiv(B, TM)
    Bp = G * TM                                  # padded width of the (tiny) output only

    sem = (pltpu.CORE_PARALLEL if core_parallel else "parallel",)

    out = pl.pallas_call(
        critic_kernel,
        out_shape=jax.ShapeDtypeStruct((1, Bp), jnp.float32),
        grid=(G,),
        in_specs=[
            pl.BlockSpec((TM, S), lambda i: (i, 0)),            # x: tiled over batch
            pl.BlockSpec((S, HIDDEN), lambda i: (0, 0)),        # w1: resident
            pl.BlockSpec((1, HIDDEN), lambda i: (0, 0)),        # b1: resident
            pl.BlockSpec((1, HIDDEN), lambda i: (0, 0)),        # w3 row vector
            pl.BlockSpec(memory_space=pltpu.MemorySpace.SMEM),  # b3 scalar in SMEM
        ],
        out_specs=pl.BlockSpec((1, TM), lambda i: (0, i)),      # lane-dense row output
        compiler_params=pltpu.CompilerParams(dimension_semantics=sem),
    )(x, w1, b1, w3, b3)

    return out[0, :B][:, None]                   # back to [B, 1]


def init_params(key, state_space, hidden=HIDDEN):
    # Mimics PyTorch's default Linear init: uniform(-1/sqrt(fan_in), 1/sqrt(fan_in)).
    k1, k2, k3, k4 = jax.random.split(key, 4)
    bound1 = 1.0 / jnp.sqrt(jnp.float32(state_space))
    bound3 = 1.0 / jnp.sqrt(jnp.float32(hidden))
    w1 = jax.random.uniform(k1, (state_space, hidden), jnp.float32, -bound1, bound1)
    b1 = jax.random.uniform(k2, (1, hidden), jnp.float32, -bound1, bound1)
    w3 = jax.random.uniform(k3, (1, hidden), jnp.float32, -bound3, bound3)
    b3 = jax.random.uniform(k4, (1, 1), jnp.float32, -bound3, bound3)
    return w1, b1, w3, b3


def reference_forward(x, w1, b1, w3, b3):
    # Full-precision reference (HIGHEST so the f32 GEMM is not silently bf16).
    h = jnp.maximum(jnp.dot(x, w1, precision=jax.lax.Precision.HIGHEST) + b1, 0.0)
    return jnp.sum(h * w3, axis=-1, keepdims=True) + b3[0, 0]


if __name__ == "__main__":
    key = jax.random.PRNGKey(0)
    state_space = 4        # pendulum observation dim
    kx, kp, kx2 = jax.random.split(key, 3)
    w1, b1, w3, b3 = init_params(kp, state_space)

    # 1) Small batch: single tile, block dims == array dims, no padding anywhere.
    x = jax.random.normal(kx, (8, state_space), jnp.float32)
    out = jax.block_until_ready(critic_forward(x, w1, b1, w3, b3))
    assert out.shape == (8, 1)
    assert jnp.allclose(out, reference_forward(x, w1, b1, w3, b3), atol=1e-4, rtol=1e-4)

    # 2) Typical RL batch: still one tile under the default tm=2048.
    x2 = jax.random.normal(kx2, (300, state_space), jnp.float32)
    out2 = jax.block_until_ready(critic_forward(x2, w1, b1, w3, b3))
    assert out2.shape == (300, 1)
    assert jnp.allclose(out2, reference_forward(x2, w1, b1, w3, b3), atol=1e-4, rtol=1e-4)

    # 3) Multi-tile path with a ragged final block (300 = 2*128 + 44): exercises
    #    the grid=cdiv + masked-tail path that avoids any jnp.pad copy of x.
    out3 = jax.block_until_ready(critic_forward(x2, w1, b1, w3, b3, tm=128))
    assert out3.shape == (300, 1)
    assert jnp.allclose(out3, reference_forward(x2, w1, b1, w3, b3), atol=1e-4, rtol=1e-4)

    print("KERNEL_OK")
</pallas_src>

<mosaic_0001>
module attributes {stable_mosaic.version = 11 : i64} {
  func.func @critic_kernel(%arg0: i32, %arg1: memref<8x4xf32, #tpu.memory_space<vmem>>, %arg2: memref<4x128xf32, #tpu.memory_space<vmem>>, %arg3: memref<1x128xf32, #tpu.memory_space<vmem>>, %arg4: memref<1x128xf32, #tpu.memory_space<vmem>>, %arg5: memref<1x1xf32, #tpu.memory_space<smem>>, %arg6: memref<1x8xf32, #tpu.memory_space<vmem>>) attributes {dimension_semantics = [#tpu.dimension_semantics<parallel>], iteration_bounds = array<i64: 1>, scalar_prefetch = 0 : i64, scratch_operands = 0 : i64, tpu.core_type = #tpu.core_type<tc>, window_params = [{transform_indices = @transform_0, window_bounds = array<i64: 8, 4>}, {pipeline_mode = #tpu.pipeline_mode<synchronous>, transform_indices = @transform_1, window_bounds = array<i64: 4, 128>}, {pipeline_mode = #tpu.pipeline_mode<synchronous>, transform_indices = @transform_2, window_bounds = array<i64: 1, 128>}, {pipeline_mode = #tpu.pipeline_mode<synchronous>, transform_indices = @transform_3, window_bounds = array<i64: 1, 128>}, {transform_indices = @transform_4, window_bounds = array<i64: 1, 1>}, {transform_indices = @transform_5, window_bounds = array<i64: 1, 8>}]} {
    %c0 = arith.constant 0 : index
    %c0_0 = arith.constant 0 : index
    %0 = vector.load %arg1[%c0, %c0_0] : memref<8x4xf32, #tpu.memory_space<vmem>>, vector<8x4xf32>
    %c0_1 = arith.constant 0 : index
    %c0_2 = arith.constant 0 : index
    %1 = vector.load %arg2[%c0_1, %c0_2] : memref<4x128xf32, #tpu.memory_space<vmem>>, vector<4x128xf32>
    %c0_3 = arith.constant 0 : index
    %c0_4 = arith.constant 0 : index
    %2 = vector.load %arg3[%c0_3, %c0_4] : memref<1x128xf32, #tpu.memory_space<vmem>>, vector<1x128xf32>
    %3 = vector.extract_strided_slice %0 {offsets = [0, 0], sizes = [8, 1], strides = [1, 1]} : vector<8x4xf32> to vector<8x1xf32>
    %4 = vector.extract_strided_slice %1 {offsets = [0, 0], sizes = [1, 128], strides = [1, 1]} : vector<4x128xf32> to vector<1x128xf32>
    %5 = vector.broadcast %3 : vector<8x1xf32> to vector<8x128xf32>
    %6 = vector.broadcast %4 : vector<1x128xf32> to vector<8x128xf32>
    %7 = arith.mulf %5, %6 : vector<8x128xf32>
    %8 = vector.broadcast %2 : vector<1x128xf32> to vector<8x128xf32>
    %9 = arith.addf %8, %7 : vector<8x128xf32>
    %10 = vector.extract_strided_slice %0 {offsets = [0, 1], sizes = [8, 1], strides = [1, 1]} : vector<8x4xf32> to vector<8x1xf32>
    %11 = vector.extract_strided_slice %1 {offsets = [1, 0], sizes = [1, 128], strides = [1, 1]} : vector<4x128xf32> to vector<1x128xf32>
    %12 = vector.broadcast %10 : vector<8x1xf32> to vector<8x128xf32>
    %13 = vector.broadcast %11 : vector<1x128xf32> to vector<8x128xf32>
    %14 = arith.mulf %12, %13 : vector<8x128xf32>
    %15 = arith.addf %9, %14 : vector<8x128xf32>
    %16 = vector.extract_strided_slice %0 {offsets = [0, 2], sizes = [8, 1], strides = [1, 1]} : vector<8x4xf32> to vector<8x1xf32>
    %17 = vector.extract_strided_slice %1 {offsets = [2, 0], sizes = [1, 128], strides = [1, 1]} : vector<4x128xf32> to vector<1x128xf32>
    %18 = vector.broadcast %16 : vector<8x1xf32> to vector<8x128xf32>
    %19 = vector.broadcast %17 : vector<1x128xf32> to vector<8x128xf32>
    %20 = arith.mulf %18, %19 : vector<8x128xf32>
    %21 = arith.addf %15, %20 : vector<8x128xf32>
    %22 = vector.extract_strided_slice %0 {offsets = [0, 3], sizes = [8, 1], strides = [1, 1]} : vector<8x4xf32> to vector<8x1xf32>
    %23 = vector.extract_strided_slice %1 {offsets = [3, 0], sizes = [1, 128], strides = [1, 1]} : vector<4x128xf32> to vector<1x128xf32>
    %24 = vector.broadcast %22 : vector<8x1xf32> to vector<8x128xf32>
    %25 = vector.broadcast %23 : vector<1x128xf32> to vector<8x128xf32>
    %26 = arith.mulf %24, %25 : vector<8x128xf32>
    %27 = arith.addf %21, %26 : vector<8x128xf32>
    %cst = arith.constant 0.000000e+00 : f32
    %28 = vector.broadcast %cst : f32 to vector<8x128xf32>
    %29 = arith.maximumf %27, %28 : vector<8x128xf32>
    %c0_5 = arith.constant 0 : index
    %c0_6 = arith.constant 0 : index
    %30 = vector.load %arg4[%c0_5, %c0_6] : memref<1x128xf32, #tpu.memory_space<vmem>>, vector<1x128xf32>
    %31 = vector.broadcast %30 : vector<1x128xf32> to vector<8x128xf32>
    %32 = arith.mulf %29, %31 : vector<8x128xf32>
    %cst_7 = arith.constant dense<0.000000e+00> : vector<8xf32>
    %33 = vector.multi_reduction <add>, %32, %cst_7 [1] : vector<8x128xf32> to vector<8xf32>
    %c0_8 = arith.constant 0 : index
    %c0_9 = arith.constant 0 : index
    %34 = memref.load %arg5[%c0_8, %c0_9] : memref<1x1xf32, #tpu.memory_space<smem>>
    %35 = vector.broadcast %34 : f32 to vector<8xf32>
    %36 = arith.addf %33, %35 : vector<8xf32>
    %37 = vector.shape_cast %36 : vector<8xf32> to vector<1x8xf32>
    %c0_10 = arith.constant 0 : index
    %c0_11 = arith.constant 0 : index
    %38 = vector.load %arg6[%c0_10, %c0_11] : memref<1x8xf32, #tpu.memory_space<vmem>>, vector<1x8xf32>
    tpu.vector_store %arg6[%c0_10, %c0_11], %37 {strides = array<i32>} : memref<1x8xf32, #tpu.memory_space<vmem>>, vector<1x8xf32>,
    return
  }
  func.func @transform_0(%arg0: i32) -> (i32, i32) {
    %c0_i32 = arith.constant 0 : i32
    %c0_i32_0 = arith.constant 0 : i32
    return %arg0, %c0_i32 : i32, i32
  }
  func.func @transform_1(%arg0: i32) -> (i32, i32) {
    %c0_i32 = arith.constant 0 : i32
    %c0_i32_0 = arith.constant 0 : i32
    %c0_i32_1 = arith.constant 0 : i32
    return %c0_i32, %c0_i32_0 : i32, i32
  }
  func.func @transform_2(%arg0: i32) -> (i32, i32) {
    %c0_i32 = arith.constant 0 : i32
    %c0_i32_0 = arith.constant 0 : i32
    %c0_i32_1 = arith.constant 0 : i32
    return %c0_i32, %c0_i32_0 : i32, i32
  }
  func.func @transform_3(%arg0: i32) -> (i32, i32) {
    %c0_i32 = arith.constant 0 : i32
    %c0_i32_0 = arith.constant 0 : i32
    %c0_i32_1 = arith.constant 0 : i32
    return %c0_i32, %c0_i32_0 : i32, i32
  }
  func.func @transform_4(%arg0: i32) -> (i32, i32) {
    %c0_i32 = arith.constant 0 : i32
    %c0_i32_0 = arith.constant 0 : i32
    %c0_i32_1 = arith.constant 0 : i32
    return %c0_i32, %c0_i32_0 : i32, i32
  }
  func.func @transform_5(%arg0: i32) -> (i32, i32) {
    %c0_i32 = arith.constant 0 : i32
    %c0_i32_0 = arith.constant 0 : i32
    return %c0_i32, %arg0 : i32, i32
  }
}

</mosaic_0001>

<bundles_post_ra>
// kernel: tpu_custom_call.1
= control target key start
LH: loop header
LB: loop body
LE: loop exit
PB: predicated region body
PF: predicated region fallthrough
CT: control target
= control target key end

     0   :  { %v144_v1 = vmov 0   ;;  %v145_v2 = vmov 2   ;;  %s197_s0 = inlined_call_operand.vmem [shape: f32[8,4], index: 0, kind: input, shape index: {}]   ;;  %s198_s1 = inlined_call_operand.vmem [shape: f32[4,128], index: 1, kind: input, shape index: {}]   ;;  %s199_s2 = inlined_call_operand.vmem [shape: f32[1,128], index: 2, kind: input, shape index: {}]   ;;  %s200_s3 = inlined_call_operand.vmem [shape: f32[1,128], index: 3, kind: input, shape index: {}]   ;;  %s201_s4 = inlined_call_operand.<no memory space> [shape: f32[1,1], index: 4, kind: input, shape index: {}]   ;;  %s202_s5 = inlined_call_operand.hbm [shape: f32[1,8], index: 5, kind: output, shape index: {}]  }
   0x1   :  { %v22_v0 = vld [vmem:[%s197_s0] sm:$0xff]  ;;  %117 = vset.pattern.permute.xlu0 %v144_v1  ;;  %119 = vset.pattern.permute.xlu1 %v145_v2 }
   0x2   :  { %11 = vsyncpa [#allocation4], 0  ;;  %27 = vperm.xlu0 %117, %v22_v0   ;;  %53 = vperm.xlu1 %119, %v22_v0   ;;  %v146_v3 = vmov 1   ;;  %v147_v4 = vmov 3   ;;  %v30_v5 = vlaneseq  ;;  %v23_v10 = vld [vmem:[%s198_s1] sm:$0xf]  ;;  %v84_v34 = vstv %s201_s4 }
   0x3   :  { %v110_v19 = vld [vmem:[%s199_s2] ss:$0 sm:$0xff]  ;;  %s148_s25 = smov [#allocation3]   ;;  %vm94_vm0 = vcmask 57344  }
   0x4   :  { %v31_v6 = vshrl.u32 %v30_v5, 7  ;;  %v88_v7 = vand.u32 127, %v30_v5  ;;  %v111_v31 = vld [vmem:[%s200_s3] ss:$0 sm:$0xff]  ;;  %s102_s26 = sshll.u32 %s148_s25, 4  ;;  %s103_s26 = int_to_ptr.vmem [resolvable:$true] %s102_s26 }
   0x5   :  { %s122_s27 = scalar_lea.vmem %s103_s26, 16  ;;  %s126_s28 = scalar_lea.vmem %s103_s26, 32 }
   0x6   :  { %118 = vset.pattern.permute.xlu0 %v146_v3  ;;  %120 = vset.pattern.permute.xlu1 %v147_v4  ;;  %v91_v8 = vsub.s32 %v88_v7, %v31_v6  ;;  %v32_v9 = vsub.s32 0, %v31_v6  ;;  %v48_v12 = vsub.s32 1, %v31_v6  ;;  %v58_v14 = vsub.s32 2, %v31_v6  ;;  %p123_p0 = scmp.ne.s32.totalorder %s103_s26, %s122_s27  ;;  %p127_p1 = scmp.lt.s32.totalorder %s103_s26, %s103_s26 }
   0x7   :  { %43 = vperm.xlu0 %118, %v22_v0   ;;  %63 = vperm.xlu1 %120, %v22_v0   ;;  %v68_v16 = vsub.s32 3, %v31_v6  ;;  %p128_p2 = scmp.lt.s32.totalorder %s126_s28, %s122_s27 }
   0x8   :  { %v33_v11 = vrot.slane %v23_v10, %v32_v9  ;;  %v49_v18 = vrot.slane %v23_v10, %v48_v12  ;;  %v59_v20 = vrot.slane %v23_v10, %v58_v14 }
   0x9   :  { %v69_v21 = vrot.slane %v23_v10, %v68_v16  ;;  %p129_p3 = por %p128_p2, %p127_p1 }
   0xb   :  { %121 = vset.pattern.permute.xlu0 %v147_v4  ;;  %p130_p4 = pnand %p129_p3, %p123_p0 }
  0x7d   :  { %v28_v13 = vpop.permute.xlu0 %27  ;;  %v54_v15 = vpop.permute.xlu1 %53 }
  0x7e   :  { %v34_v17 = vmul.f32 %v33_v11, %v28_v13  ;;  %v60_v26 = vmul.f32 %v59_v20, %v54_v15 }
  0x80   :  { %v41_v24 = vadd.f32 %v110_v19, %v34_v17 }
  0x82   :  { %v44_v22 = vpop.permute.xlu0 %43  ;;  %v64_v23 = vpop.permute.xlu1 %63 }
  0x83   :  { %v50_v25 = vmul.f32 %v49_v18, %v44_v22  ;;  %v70_v28 = vmul.f32 %v69_v21, %v64_v23 }
  0x85   :  { %v51_v27 = vadd.f32 %v50_v25, %v41_v24 }
  0x87   :  { %v61_v29 = vadd.f32 %v60_v26, %v51_v27 }
  0x89   :  { %v71_v30 = vadd.f32 %v70_v28, %v61_v29 }
  0x8b   :  { %v72_v32 = vmax.f32 %v71_v30, 0.0 }
  0x8d   :  { %v80_v33 = vmul.f32 %v111_v31, %v72_v32 }
  0x8f   :  { %81 = vadd.xlane.f32.xlu1 %v80_v33 }
 0x118   :  { %v82_v35 = vpop.xlane.xlu1 %81 }
 0x119   :  { %v85_v36 = vadd.f32 %v84_v34, %v82_v35 }
 0x11b   :  { %v92_v37 = vrot.slane %v85_v36, %v91_v8 }
 0x11d   :  { %95 = vst.msk [vmem:[#allocation3] sm:$0x1] %vm94_vm0, %v92_v37 }
 0x11e   :  { %133 = shalt.err (!%p130_p4)
}
 0x11f   :  { %105 = dma.vmem_to_hbm [thread:$0]  %s103_s26, 16, %s202_s5, [#allocation4]  }
 0x120   :  { %142 = dma.done.wait [#allocation4], 16  }
 0x121   :  { %143 = vsyncadd [#allocation4], 4294967280 }
 0x122   :  { %109 = vsyncpa [#allocation4], 1 }

</bundles_post_ra>
